<compile_context>
chip_gen: v7x
topology: tpu7x:2x2x1
jax: 0.10.0
libtpu: 0.0.40
codegen_flags: <defaults>
</compile_context>

<pallas_src>
import math
from functools import partial

import jax
import jax.numpy as jnp
from jax.experimental import pallas as pl
from jax.experimental.pallas import tpu as pltpu

_PALLAS_MIN_BYTES = 1 << 20      # below ~1 MiB a plain XLA copy wins
_TARGET_CHUNK_BYTES = 8 << 20    # ~8 MiB per DMA chunk for large copies


def _hbm_copy_kernel(src_hbm, dst_hbm, sem, *, chunk_rows, last_rows):
    """Copy one row-chunk of src -> dst with a direct async DMA (no VMEM staging)."""
    i = pl.program_id(0)
    n = pl.num_programs(0)
    start = i * chunk_rows

    @pl.when(i < n - 1)
    def _():
        cp = pltpu.make_async_copy(
            src_hbm.at[pl.ds(start, chunk_rows), :],
            dst_hbm.at[pl.ds(start, chunk_rows), :],
            sem,
        )
        cp.start()
        cp.wait()

    @pl.when(i == n - 1)
    def _():
        cp = pltpu.make_async_copy(
            src_hbm.at[pl.ds(start, last_rows), :],
            dst_hbm.at[pl.ds(start, last_rows), :],
            sem,
        )
        cp.start()
        cp.wait()


def _pallas_hbm_copy(x: jax.Array) -> jax.Array:
    """Bit-exact fresh copy of a 2-D array via chunked HBM->HBM DMAs."""
    rows, _ = x.shape
    nbytes = x.size * x.dtype.itemsize

    # >=2 chunks when there is anything to split (feeds both v7x TensorCores),
    # ~8 MiB chunks for large parameters.
    num_chunks = min(rows, max(2, pl.cdiv(nbytes, _TARGET_CHUNK_BYTES)))
    num_chunks = max(num_chunks, 1)
    chunk_rows = pl.cdiv(rows, num_chunks)
    grid_size = pl.cdiv(rows, chunk_rows)
    last_rows = rows - (grid_size - 1) * chunk_rows

    kernel = partial(_hbm_copy_kernel, chunk_rows=chunk_rows, last_rows=last_rows)
    return pl.pallas_call(
        kernel,
        out_shape=jax.ShapeDtypeStruct(x.shape, x.dtype),
        grid=(grid_size,),
        in_specs=[pl.BlockSpec(memory_space=pl.ANY)],
        out_specs=pl.BlockSpec(memory_space=pl.ANY),
        scratch_shapes=[pltpu.SemaphoreType.DMA(())],
        compiler_params=pltpu.CompilerParams(
            dimension_semantics=("parallel",),
        ),
        cost_estimate=pl.CostEstimate(
            flops=0, transcendentals=0, bytes_accessed=2 * nbytes
        ),
    )(x)


_pallas_hbm_copy_jit = jax.jit(_pallas_hbm_copy)


def param_embed_forward(
    node_embed: jax.Array,
    num_graph_nodes: int,
    *,
    materialize: bool = False,
    force_pallas: bool = False,
) -> jax.Array:
    """Pallas equivalent of ParamEmbed.forward(graph).

    node_embed:       [num_nodes, latent_dim] float32 parameter.
    num_graph_nodes:  node count of the input graph (mirrors the PyTorch assert).
    materialize:      False (default) -> return the parameter itself (exact
                      PyTorch semantics, zero data movement).  True -> return a
                      genuinely fresh copy.
    force_pallas:     force the Pallas DMA-copy kernel even below the size gate
                      (used by the demo / tests).
    """
    num_nodes, _latent_dim = node_embed.shape
    assert num_graph_nodes == num_nodes, "graph.pg.num_nodes() != self.num_nodes"
    if not materialize:
        return node_embed

    nbytes = node_embed.size * node_embed.dtype.itemsize
    if nbytes < _PALLAS_MIN_BYTES and not force_pallas:
        # Tiny parameter (the real module is 8x32 = 1 KiB): a custom call can
        # only lose here; let XLA do the copy.
        return jnp.copy(node_embed)
    return _pallas_hbm_copy_jit(node_embed)


def glorot_uniform_init(key, num_nodes: int, latent_dim: int) -> jax.Array:
    """glorot_uniform init matching the PyTorch parameter shape."""
    limit = math.sqrt(6.0 / (num_nodes + latent_dim))
    return jax.random.uniform(
        key, (num_nodes, latent_dim), minval=-limit, maxval=limit, dtype=jnp.float32
    )


if __name__ == "__main__":
    # Shapes consistent with the module: 8-node graph, latent_dim=32.
    num_nodes = 8
    latent_dim = 32

    key = jax.random.PRNGKey(0)
    node_embed = glorot_uniform_init(key, num_nodes, latent_dim)
    expected = jax.device_get(node_embed)

    # The "graph" only contributes its node count to the forward pass.
    graph_num_nodes = num_nodes

    # 1) True forward semantics: identity, zero data movement (matches PyTorch).
    out_fast = jax.block_until_ready(param_embed_forward(node_embed, graph_num_nodes))
    assert out_fast.shape == (num_nodes, latent_dim)
    assert jnp.allclose(out_fast, jnp.asarray(expected))

    # 2) Materialize path, forced through the Pallas HBM->HBM DMA copy kernel
    #    (the size gate would normally route a 1 KiB parameter to jnp.copy).
    out_mat = jax.block_until_ready(
        param_embed_forward(
            node_embed, graph_num_nodes, materialize=True, force_pallas=True
        )
    )
    assert out_mat.shape == (num_nodes, latent_dim)
    assert bool(jnp.all(out_mat == jnp.asarray(expected)))

    # 3) Materialize path at the default gate (plain XLA copy for tiny params).
    out_small = jax.block_until_ready(
        param_embed_forward(node_embed, graph_num_nodes, materialize=True)
    )
    assert bool(jnp.all(out_small == jnp.asarray(expected)))

    print("KERNEL_OK")
</pallas_src>

<mosaic_0001>
module attributes {stable_mosaic.version = 11 : i64} {
  func.func @_hbm_copy_kernel(%arg0: i32, %arg1: memref<8x32xf32, #tpu.memory_space<any>>, %arg2: memref<8x32xf32, #tpu.memory_space<any>>, %arg3: memref<!tpu.dma_semaphore, #tpu.memory_space<semaphore_mem>>) attributes {dimension_semantics = [#tpu.dimension_semantics<parallel>], iteration_bounds = array<i64: 2>, scalar_prefetch = 0 : i64, scratch_operands = 1 : i64, tpu.core_type = #tpu.core_type<tc>, window_params = [{}, {}]} {
    %c4_i32 = arith.constant 4 : i32
    %0 = arith.muli %arg0, %c4_i32 : i32
    %c1_i32 = arith.constant 1 : i32
    %1 = arith.cmpi slt, %arg0, %c1_i32 : i32
    %2 = arith.extui %1 : i1 to i32
    %c0_i32 = arith.constant 0 : i32
    %3 = arith.cmpi ne, %2, %c0_i32 : i32
    scf.if %3 {
      %c0_i32_2 = arith.constant 0 : i32
      %7 = tpu.memref_slice %arg1[%0, %c0_i32_2] : memref<8x32xf32, #tpu.memory_space<any>> -> memref<4x32xf32, #tpu.memory_space<any>>
      %c0_i32_3 = arith.constant 0 : i32
      %8 = tpu.memref_slice %arg2[%0, %c0_i32_3] : memref<8x32xf32, #tpu.memory_space<any>> -> memref<4x32xf32, #tpu.memory_space<any>>
      tpu.enqueue_dma source(%7 : memref<4x32xf32, #tpu.memory_space<any>>) target(%8 : memref<4x32xf32, #tpu.memory_space<any>>) target_semaphore(%arg3 : memref<!tpu.dma_semaphore, #tpu.memory_space<semaphore_mem>>)
      %c0_i32_4 = arith.constant 0 : i32
      %9 = tpu.memref_slice %arg1[%0, %c0_i32_4] : memref<8x32xf32, #tpu.memory_space<any>> -> memref<4x32xf32, #tpu.memory_space<any>>
      %c0_i32_5 = arith.constant 0 : i32
      %10 = tpu.memref_slice %arg2[%0, %c0_i32_5] : memref<8x32xf32, #tpu.memory_space<any>> -> memref<4x32xf32, #tpu.memory_space<any>>
      tpu.wait_dma2 semaphore(%arg3 : memref<!tpu.dma_semaphore, #tpu.memory_space<semaphore_mem>>) src(%9 : memref<4x32xf32, #tpu.memory_space<any>>) dst(%10 : memref<4x32xf32, #tpu.memory_space<any>>)
    } else {
    }
    %c1_i32_0 = arith.constant 1 : i32
    %4 = arith.cmpi eq, %arg0, %c1_i32_0 : i32
    %5 = arith.extui %4 : i1 to i32
    %c0_i32_1 = arith.constant 0 : i32
    %6 = arith.cmpi ne, %5, %c0_i32_1 : i32
    scf.if %6 {
      %c0_i32_2 = arith.constant 0 : i32
      %7 = tpu.memref_slice %arg1[%0, %c0_i32_2] : memref<8x32xf32, #tpu.memory_space<any>> -> memref<4x32xf32, #tpu.memory_space<any>>
      %c0_i32_3 = arith.constant 0 : i32
      %8 = tpu.memref_slice %arg2[%0, %c0_i32_3] : memref<8x32xf32, #tpu.memory_space<any>> -> memref<4x32xf32, #tpu.memory_space<any>>
      tpu.enqueue_dma source(%7 : memref<4x32xf32, #tpu.memory_space<any>>) target(%8 : memref<4x32xf32, #tpu.memory_space<any>>) target_semaphore(%arg3 : memref<!tpu.dma_semaphore, #tpu.memory_space<semaphore_mem>>)
      %c0_i32_4 = arith.constant 0 : i32
      %9 = tpu.memref_slice %arg1[%0, %c0_i32_4] : memref<8x32xf32, #tpu.memory_space<any>> -> memref<4x32xf32, #tpu.memory_space<any>>
      %c0_i32_5 = arith.constant 0 : i32
      %10 = tpu.memref_slice %arg2[%0, %c0_i32_5] : memref<8x32xf32, #tpu.memory_space<any>> -> memref<4x32xf32, #tpu.memory_space<any>>
      tpu.wait_dma2 semaphore(%arg3 : memref<!tpu.dma_semaphore, #tpu.memory_space<semaphore_mem>>) src(%9 : memref<4x32xf32, #tpu.memory_space<any>>) dst(%10 : memref<4x32xf32, #tpu.memory_space<any>>)
    } else {
    }
    return
  }
}

</mosaic_0001>

<bundles_post_ra>
// kernel: _pallas_hbm_copy.1
= control target key start
LH: loop header
LB: loop body
LE: loop exit
PB: predicated region body
PF: predicated region fallthrough
CT: control target
= control target key end

     0   :  { %s125_s6 = smov 0   ;;  %s149_s0 = inlined_call_operand.hbm [shape: f32[8,32], index: 0, kind: input, shape index: {}]   ;;  %s150_s1 = inlined_call_operand.hbm [shape: f32[8,32], index: 1, kind: output, shape index: {}]  }
   0x1 LB: > { %p99_p0 = scmp.lt.s32.totalorder %s127_s6, 1  ;;  %s89_s7 = sshll.u32 %s127_s6, 6  ;;  %s127_s6 = sphi %s125_s6, %s11_s6  }
   0x2   : > { %s19_s10 = scalar_lea.hbm %s149_s0, %s89_s7  ;;  %s21_s13 = scalar_lea.hbm %s150_s1, %s89_s7 }
   0x3   : > { %s129_s14 = smov [#allocation2]   ;;  %s130_s15 = smov [#allocation3]  }
   0x4   : > { %s131_s16 = smov 0  }
   0x5   : > { %94 = dma.general (%p99_p0), %s19_s10, 64, %s21_s13, %s129_s14, %s130_s15, [#allocation4], %s131_s16, 0  }
   0x6   : > { %118 = dma.done.wait (%p99_p0), [#allocation2], 64 }
   0x7   : > { %120 = vsyncadd (%p99_p0), [#allocation2], 4294967232  ;;  %p100_p1 = scmp.eq.s32.totalorder %s127_s6, 1  ;;  %s132_s17 = smov [#allocation5]  }
   0x9   : > { %97 = dma.general (%p100_p1), %s19_s10, 64, %s21_s13, %s129_s14, %s132_s17, [#allocation6], %s131_s16, 0  }
   0xa   : > { %122 = dma.done.wait (%p100_p1), [#allocation2], 64 }
   0xb   : > { %124 = vsyncadd (%p100_p1), [#allocation2], 4294967232  ;;  %s11_s6 = sadd.s32 1, %s127_s6  }
   0xc   : > { %p8_p2 = scmp.ge.s32.totalorder %s11_s6, 2  }
   0xe   :  { %10 = sbr.rel (!%p8_p2) target bundleno = 1 (0x1), region = 31 }
  0x15   :  { %62 = vsyncmov [#allocation2] }
  0x18   :  { %s63_s18 = vpop.sfrf %62 }
  0x19   :  { %p88_p3 = scmp.ne.s32.totalorder %s63_s18, 0 }
  0x1b   :  { %67 = shalt.err (%p88_p3)  }

</bundles_post_ra>
